<compile_context>
chip_gen: v7x
topology: tpu7x:2x2x1
jax: 0.10.0
libtpu: 0.0.40
codegen_flags: <defaults>
</compile_context>

<pallas_src>
import functools
import math

import jax
import jax.numpy as jnp
from jax.experimental import pallas as pl
from jax.experimental.pallas import tpu as pltpu

MAX_VQA_LENGTH = 20


def _round_up(x, m):
    return ((x + m - 1) // m) * m


def _gelu_erf(x):
    # Matches LXMERT GeLU: x * 0.5 * (1 + erf(x / sqrt(2)))
    return x * 0.5 * (1.0 + jax.lax.erf(x * (1.0 / math.sqrt(2.0))))


# ---------------------------------------------------------------------------
# Kernel A: hn_mean = mean_i LayerNorm(GeLU(x_i @ W1 + b1))       -> (b_pad, 2*hid) bf16
# ---------------------------------------------------------------------------
def _prologue_mean_kernel(x_ref, w1_ref, b1_ref, g_ref, be_ref, hn_ref, *, n_subs):
    w1 = w1_ref[...]
    b1 = b1_ref[...]
    g = g_ref[...]
    be = be_ref[...]
    acc = jnp.zeros(hn_ref.shape, jnp.float32)
    # Static (unrolled) loop over the substitution copies; each step is a 2-D
    # bf16 MXU matmul with an f32 GeLU/LayerNorm epilogue, so the live f32
    # working set stays at (tile_b, 2*hid).
    for s in range(n_subs):
        h = jnp.dot(x_ref[s], w1, preferred_element_type=jnp.float32) + b1
        h = _gelu_erf(h)
        u = jnp.mean(h, axis=-1, keepdims=True)
        d = h - u
        v = jnp.mean(d * d, axis=-1, keepdims=True)
        acc = acc + (g * (d * jax.lax.rsqrt(v + 1e-12)) + be)   # rsqrt on EUP
    # Average in f32, single cast to bf16 for the W2 matmul.
    hn_ref[...] = (acc * (1.0 / n_subs)).astype(hn_ref.dtype)


# ---------------------------------------------------------------------------
# Kernel B: logits = hn_mean @ W2 + b2   (N-tiled over the padded answer axis)
# ---------------------------------------------------------------------------
def _w2_kernel(hn_ref, w2_ref, b2_ref, out_ref):
    out_ref[...] = (jnp.dot(hn_ref[...], w2_ref[...],
                            preferred_element_type=jnp.float32)
                    + b2_ref[...]).astype(out_ref.dtype)


def vqa_logit_fc_mean(x_all, w1, b1, gamma, beta, w2, b2, *, n_answer_tiles=None):
    """x_all: (n_subs, b, hid) -> (b, num_answers) = mean_i logit_fc(x_all[i]).

    n_answer_tiles: number of answer-axis tiles for the W2 matmul.  None (the
    default) picks a single tile, which is best on single-TensorCore v5e/v6e;
    pass 2 on v7x so both TensorCores each stream half of W2.
    """
    n_subs, b, hid = x_all.shape
    hid2 = w1.shape[1]
    na = w2.shape[1]

    # Batch padded to bf16 sublane packing (16 rows); batch-block the grid so
    # the per-step f32 working set stays bounded at large batch.
    b_pad = _round_up(b, 16)
    tile_b = min(b_pad, 128)
    b_pad = _round_up(b_pad, tile_b)

    # Answer axis: lane-dense padding.  Default: single tile if the bf16 W2
    # tile stays under ~24 MiB of VMEM (true at real LXMERT shapes), otherwise
    # the minimal tile count that fits.
    if n_answer_tiles is None:
        n_answer_tiles = 1
        while (_round_up(na, n_answer_tiles * 128) // n_answer_tiles) * hid2 * 2 > (24 << 20):
            n_answer_tiles += 1
    na_pad = _round_up(na, n_answer_tiles * 128)
    tile_n = na_pad // n_answer_tiles
    assert tile_n % 128 == 0 and na_pad % tile_n == 0 and b_pad % tile_b == 0

    # Cast to kernel dtypes BEFORE padding (halves the wrapper pad/copy HBM
    # traffic); pad W2/b2 directly in their final dtypes.
    x = jnp.pad(x_all.astype(jnp.bfloat16), ((0, 0), (0, b_pad - b), (0, 0)))
    w1b = w1.astype(jnp.bfloat16)
    b1f = jnp.reshape(b1, (1, hid2)).astype(jnp.float32)
    gf = jnp.reshape(gamma, (1, hid2)).astype(jnp.float32)
    bef = jnp.reshape(beta, (1, hid2)).astype(jnp.float32)
    w2b = jnp.pad(w2.astype(jnp.bfloat16), ((0, 0), (0, na_pad - na)))
    b2f = jnp.pad(jnp.reshape(b2, (1, na)).astype(jnp.float32),
                  ((0, 0), (0, na_pad - na)))

    single = pl.Buffered(1)   # grid-invariant operands: no double buffering

    # ---- Kernel A: prologue + mean over n_subs, tiled over batch blocks ----
    hn = pl.pallas_call(
        functools.partial(_prologue_mean_kernel, n_subs=n_subs),
        out_shape=jax.ShapeDtypeStruct((b_pad, hid2), jnp.bfloat16),
        grid_spec=pltpu.PrefetchScalarGridSpec(
            num_scalar_prefetch=0,
            grid=(b_pad // tile_b,),
            in_specs=[
                pl.BlockSpec((n_subs, tile_b, hid), lambda i: (0, i, 0)),
                pl.BlockSpec((hid, hid2), lambda i: (0, 0), pipeline_mode=single),
                pl.BlockSpec((1, hid2), lambda i: (0, 0), pipeline_mode=single),
                pl.BlockSpec((1, hid2), lambda i: (0, 0), pipeline_mode=single),
                pl.BlockSpec((1, hid2), lambda i: (0, 0), pipeline_mode=single),
            ],
            out_specs=pl.BlockSpec((tile_b, hid2), lambda i: (i, 0)),
        ),
        compiler_params=pltpu.CompilerParams(
            dimension_semantics=("parallel",)),
    )(x, w1b, b1f, gf, bef)

    # ---- Kernel B: N-tiled W2 matmul (one tile per TensorCore on v7x) ----
    w2_mode = single if n_answer_tiles == 1 else None
    out = pl.pallas_call(
        _w2_kernel,
        out_shape=jax.ShapeDtypeStruct((b_pad, na_pad), jnp.float32),
        grid_spec=pltpu.PrefetchScalarGridSpec(
            num_scalar_prefetch=0,
            grid=(n_answer_tiles,),
            in_specs=[
                pl.BlockSpec((b_pad, hid2), lambda j: (0, 0), pipeline_mode=single),
                pl.BlockSpec((hid2, tile_n), lambda j: (0, j), pipeline_mode=w2_mode),
                pl.BlockSpec((1, tile_n), lambda j: (0, j), pipeline_mode=w2_mode),
            ],
            out_specs=pl.BlockSpec((b_pad, tile_n), lambda j: (0, j)),
        ),
        compiler_params=pltpu.CompilerParams(
            dimension_semantics=("parallel",),
            # v5e's default scoped VMEM is 16 MiB; a single-tile W2 at real
            # LXMERT shapes needs more.  48 MiB stays under every
            # generation's physical VMEM (v7x: 64 MiB).
            vmem_limit_bytes=48 * 1024 * 1024),
    )(hn, w2b, b2f)

    # TODO(synk): optional int8 W2 path (per-column scales) would halve the
    # W2 HBM stream on v5e/v6e; not added here (no int MXU path on v7x).
    return out[:b, :na]


# ---------------------------------------------------------------------------
# Plain-JAX glue: deterministic parameter init + LXRT-encoder stand-in.
# ---------------------------------------------------------------------------

def init_params(key, hid, num_answers, vis_feat, vocab):
    # init_bert_weights: Linear weights ~ N(0, 0.02), biases = 0, LN gamma=1, beta=0.
    k = jax.random.split(key, 5)
    hid2 = hid * 2
    return {
        "w1": 0.02 * jax.random.normal(k[0], (hid, hid2), jnp.float32),
        "b1": jnp.zeros((1, hid2), jnp.float32),
        "gamma": jnp.ones((1, hid2), jnp.float32),
        "beta": jnp.zeros((1, hid2), jnp.float32),
        "w2": 0.02 * jax.random.normal(k[1], (hid2, num_answers), jnp.float32),
        "b2": jnp.zeros((1, num_answers), jnp.float32),
        # stand-in encoder params
        "emb": 0.02 * jax.random.normal(k[2], (vocab, hid), jnp.float32),
        "w_vis": 0.02 * jax.random.normal(k[3], (vis_feat + 4, hid), jnp.float32),
    }


def tokenize(sentences, vocab, max_len=MAX_VQA_LENGTH):
    # Deterministic toy tokenizer (hash of words), padded to max_len.
    ids = []
    for s in sentences:
        toks = [sum(ord(c) for c in w) % vocab for w in s.split()][:max_len]
        toks = toks + [0] * (max_len - len(toks))
        ids.append(toks)
    return jnp.asarray(ids, dtype=jnp.int32)


def fake_lxrt_encoder(subs_conf_i, tok_ids, feat, pos, params):
    # TODO(synk): the pretrained LXRT cross-modal transformer (LXRTEncoder) has no
    # clean Pallas equivalent; this is a deterministic pooled-feature stand-in
    # producing the (b, hid) pooled output the real encoder would return.
    lang = jnp.take(params["emb"], tok_ids, axis=0).mean(axis=1)           # (b, hid)
    vis = jnp.concatenate([feat.mean(axis=1), pos.mean(axis=1)], axis=-1)  # (b, f+4)
    vis = vis @ params["w_vis"]                                            # (b, hid)
    subs = subs_conf_i.mean(axis=0)                                        # (hid,)
    return jnp.tanh(lang + vis + subs[None, :])


def encode_all(feat, pos, sent, subs_conf_all, params):
    tok_ids = tokenize(sent, params["emb"].shape[0])
    return jnp.stack([
        fake_lxrt_encoder(subs_conf_all[i], tok_ids, feat, pos, params)
        for i in range(subs_conf_all.shape[0])
    ])  # (n_subs, b, hid)


def vqa_model_inference_forward(feat, pos, sent, subs_conf_all, params):
    x_all = encode_all(feat, pos, sent, subs_conf_all, params)
    logit = vqa_logit_fc_mean(x_all, params["w1"], params["b1"],
                              params["gamma"], params["beta"],
                              params["w2"], params["b2"])
    return logit, 0.0


def _reference_logit_fc_mean(x_all, params):
    # Pure-JAX f32 reference of logit_fc + mean over subs (for a tolerance check).
    h = jnp.einsum("sbh,hk->sbk", x_all, params["w1"]) + params["b1"]
    h = _gelu_erf(h)
    u = h.mean(-1, keepdims=True)
    d = h - u
    v = (d * d).mean(-1, keepdims=True)
    hn = params["gamma"] * (d * jax.lax.rsqrt(v + 1e-12)) + params["beta"]
    return (jnp.einsum("sbk,kn->sbn", hn, params["w2"]) + params["b2"]).mean(0)


if __name__ == "__main__":
    # Small shapes consistent with the module's forward.
    B, O, F = 2, 8, 64          # batch, object_number, visual_feature_size
    HID = 32                    # lxrt_encoder.dim (small synthetic)
    NUM_ANSWERS = 16
    N_SUBS = 3                  # subs_conf_all.shape[0]
    VOCAB = 101

    key = jax.random.PRNGKey(0)
    k_feat, k_pos, k_subs, k_par = jax.random.split(key, 4)

    feat = jax.random.normal(k_feat, (B, O, F), jnp.float32)
    pos = jax.random.uniform(k_pos, (B, O, 4), jnp.float32)
    sent = ["what color is the cat", "is there a dog"]
    subs_conf_all = jax.random.normal(k_subs, (N_SUBS, MAX_VQA_LENGTH, HID), jnp.float32)

    params = init_params(k_par, HID, NUM_ANSWERS, F, VOCAB)

    logit, aux = vqa_model_inference_forward(feat, pos, sent, subs_conf_all, params)
    logit = jax.block_until_ready(logit)
    assert logit.shape == (B, NUM_ANSWERS) and logit.dtype == jnp.float32
    assert bool(jnp.all(jnp.isfinite(logit)))

    # Tolerance check vs pure-JAX f32 reference (bf16 MXU inputs in the kernel).
    x_all = encode_all(feat, pos, sent, subs_conf_all, params)
    ref = _reference_logit_fc_mean(x_all, params)
    assert bool(jnp.allclose(logit, ref, atol=5e-2, rtol=5e-2))

    print("KERNEL_OK")
</pallas_src>

<mosaic_0001>
module attributes {stable_mosaic.version = 11 : i64} {
  func.func @_prologue_mean_kernel(%arg0: i32, %arg1: memref<3x16x32xbf16, #tpu.memory_space<vmem>>, %arg2: memref<32x64xbf16, #tpu.memory_space<vmem>>, %arg3: memref<1x64xf32, #tpu.memory_space<vmem>>, %arg4: memref<1x64xf32, #tpu.memory_space<vmem>>, %arg5: memref<1x64xf32, #tpu.memory_space<vmem>>, %arg6: memref<16x64xbf16, #tpu.memory_space<vmem>>) attributes {dimension_semantics = [#tpu.dimension_semantics<parallel>], iteration_bounds = array<i64: 1>, scalar_prefetch = 0 : i64, scratch_operands = 0 : i64, tpu.core_type = #tpu.core_type<tc>, window_params = [{transform_indices = @transform_0, window_bounds = array<i64: 3, 16, 32>}, {pipeline_mode = #tpu.pipeline_mode<synchronous>, transform_indices = @transform_1, window_bounds = array<i64: 32, 64>}, {pipeline_mode = #tpu.pipeline_mode<synchronous>, transform_indices = @transform_2, window_bounds = array<i64: 1, 64>}, {pipeline_mode = #tpu.pipeline_mode<synchronous>, transform_indices = @transform_3, window_bounds = array<i64: 1, 64>}, {pipeline_mode = #tpu.pipeline_mode<synchronous>, transform_indices = @transform_4, window_bounds = array<i64: 1, 64>}, {transform_indices = @transform_5, window_bounds = array<i64: 16, 64>}]} {
    %c0 = arith.constant 0 : index
    %c0_0 = arith.constant 0 : index
    %0 = vector.load %arg2[%c0, %c0_0] : memref<32x64xbf16, #tpu.memory_space<vmem>>, vector<32x64xbf16>
    %c0_1 = arith.constant 0 : index
    %c0_2 = arith.constant 0 : index
    %1 = vector.load %arg3[%c0_1, %c0_2] : memref<1x64xf32, #tpu.memory_space<vmem>>, vector<1x64xf32>
    %c0_3 = arith.constant 0 : index
    %c0_4 = arith.constant 0 : index
    %2 = vector.load %arg4[%c0_3, %c0_4] : memref<1x64xf32, #tpu.memory_space<vmem>>, vector<1x64xf32>
    %c0_5 = arith.constant 0 : index
    %c0_6 = arith.constant 0 : index
    %3 = vector.load %arg5[%c0_5, %c0_6] : memref<1x64xf32, #tpu.memory_space<vmem>>, vector<1x64xf32>
    %cst = arith.constant 0.000000e+00 : f32
    %4 = vector.broadcast %cst : f32 to vector<16x64xf32>
    %c0_7 = arith.constant 0 : index
    %c0_8 = arith.constant 0 : index
    %c0_9 = arith.constant 0 : index
    %5 = vector.load %arg1[%c0_7, %c0_8, %c0_9] : memref<3x16x32xbf16, #tpu.memory_space<vmem>>, vector<1x16x32xbf16>
    %6 = vector.shape_cast %5 : vector<1x16x32xbf16> to vector<16x32xbf16>
    %cst_10 = arith.constant dense<0.000000e+00> : vector<16x64xf32>
    %7 = tpu.matmul %6, %0, %cst_10 {dimension_numbers = #tpu.dot_dimension_numbers<[1], [0], [0], [1], [0, 0, 1, 1], [], []>} : vector<16x32xbf16>, vector<32x64xbf16>, vector<16x64xf32> -> vector<16x64xf32>
    %8 = vector.broadcast %1 : vector<1x64xf32> to vector<16x64xf32>
    %9 = arith.addf %7, %8 : vector<16x64xf32>
    %cst_11 = arith.constant 5.000000e-01 : f32
    %10 = vector.broadcast %cst_11 : f32 to vector<16x64xf32>
    %11 = arith.mulf %9, %10 : vector<16x64xf32>
    %cst_12 = arith.constant 0.707106769 : f32
    %12 = vector.broadcast %cst_12 : f32 to vector<16x64xf32>
    %13 = arith.mulf %9, %12 : vector<16x64xf32>
    %14 = math.erf %13 : vector<16x64xf32>
    %cst_13 = arith.constant 1.000000e+00 : f32
    %15 = vector.broadcast %cst_13 : f32 to vector<16x64xf32>
    %16 = arith.addf %15, %14 : vector<16x64xf32>
    %17 = arith.mulf %11, %16 : vector<16x64xf32>
    %cst_14 = arith.constant dense<0.000000e+00> : vector<16xf32>
    %18 = vector.multi_reduction <add>, %17, %cst_14 [1] : vector<16x64xf32> to vector<16xf32>
    %19 = vector.shape_cast %18 : vector<16xf32> to vector<16x1xf32>
    %cst_15 = arith.constant 6.400000e+01 : f32
    %20 = vector.broadcast %cst_15 : f32 to vector<16x1xf32>
    %21 = arith.divf %19, %20 : vector<16x1xf32>
    %22 = vector.broadcast %21 : vector<16x1xf32> to vector<16x64xf32>
    %23 = arith.subf %17, %22 : vector<16x64xf32>
    %24 = arith.mulf %23, %23 : vector<16x64xf32>
    %cst_16 = arith.constant dense<0.000000e+00> : vector<16xf32>
    %25 = vector.multi_reduction <add>, %24, %cst_16 [1] : vector<16x64xf32> to vector<16xf32>
    %26 = vector.shape_cast %25 : vector<16xf32> to vector<16x1xf32>
    %cst_17 = arith.constant 6.400000e+01 : f32
    %27 = vector.broadcast %cst_17 : f32 to vector<16x1xf32>
    %28 = arith.divf %26, %27 : vector<16x1xf32>
    %cst_18 = arith.constant 9.99999996E-13 : f32
    %29 = vector.broadcast %cst_18 : f32 to vector<16x1xf32>
    %30 = arith.addf %28, %29 : vector<16x1xf32>
    %31 = math.rsqrt %30 : vector<16x1xf32>
    %32 = vector.broadcast %31 : vector<16x1xf32> to vector<16x64xf32>
    %33 = arith.mulf %23, %32 : vector<16x64xf32>
    %34 = vector.broadcast %2 : vector<1x64xf32> to vector<16x64xf32>
    %35 = arith.mulf %34, %33 : vector<16x64xf32>
    %36 = vector.broadcast %3 : vector<1x64xf32> to vector<16x64xf32>
    %37 = arith.addf %35, %36 : vector<16x64xf32>
    %38 = arith.addf %4, %37 : vector<16x64xf32>
    %c1 = arith.constant 1 : index
    %c0_19 = arith.constant 0 : index
    %c0_20 = arith.constant 0 : index
    %39 = vector.load %arg1[%c1, %c0_19, %c0_20] : memref<3x16x32xbf16, #tpu.memory_space<vmem>>, vector<1x16x32xbf16>
    %40 = vector.shape_cast %39 : vector<1x16x32xbf16> to vector<16x32xbf16>
    %cst_21 = arith.constant dense<0.000000e+00> : vector<16x64xf32>
    %41 = tpu.matmul %40, %0, %cst_21 {dimension_numbers = #tpu.dot_dimension_numbers<[1], [0], [0], [1], [0, 0, 1, 1], [], []>} : vector<16x32xbf16>, vector<32x64xbf16>, vector<16x64xf32> -> vector<16x64xf32>
    %42 = vector.broadcast %1 : vector<1x64xf32> to vector<16x64xf32>
    %43 = arith.addf %41, %42 : vector<16x64xf32>
    %cst_22 = arith.constant 5.000000e-01 : f32
    %44 = vector.broadcast %cst_22 : f32 to vector<16x64xf32>
    %45 = arith.mulf %43, %44 : vector<16x64xf32>
    %cst_23 = arith.constant 0.707106769 : f32
    %46 = vector.broadcast %cst_23 : f32 to vector<16x64xf32>
    %47 = arith.mulf %43, %46 : vector<16x64xf32>
    %48 = math.erf %47 : vector<16x64xf32>
    %cst_24 = arith.constant 1.000000e+00 : f32
    %49 = vector.broadcast %cst_24 : f32 to vector<16x64xf32>
    %50 = arith.addf %49, %48 : vector<16x64xf32>
    %51 = arith.mulf %45, %50 : vector<16x64xf32>
    %cst_25 = arith.constant dense<0.000000e+00> : vector<16xf32>
    %52 = vector.multi_reduction <add>, %51, %cst_25 [1] : vector<16x64xf32> to vector<16xf32>
    %53 = vector.shape_cast %52 : vector<16xf32> to vector<16x1xf32>
    %cst_26 = arith.constant 6.400000e+01 : f32
    %54 = vector.broadcast %cst_26 : f32 to vector<16x1xf32>
    %55 = arith.divf %53, %54 : vector<16x1xf32>
    %56 = vector.broadcast %55 : vector<16x1xf32> to vector<16x64xf32>
    %57 = arith.subf %51, %56 : vector<16x64xf32>
    %58 = arith.mulf %57, %57 : vector<16x64xf32>
    %cst_27 = arith.constant dense<0.000000e+00> : vector<16xf32>
    %59 = vector.multi_reduction <add>, %58, %cst_27 [1] : vector<16x64xf32> to vector<16xf32>
    %60 = vector.shape_cast %59 : vector<16xf32> to vector<16x1xf32>
    %cst_28 = arith.constant 6.400000e+01 : f32
    %61 = vector.broadcast %cst_28 : f32 to vector<16x1xf32>
    %62 = arith.divf %60, %61 : vector<16x1xf32>
    %cst_29 = arith.constant 9.99999996E-13 : f32
    %63 = vector.broadcast %cst_29 : f32 to vector<16x1xf32>
    %64 = arith.addf %62, %63 : vector<16x1xf32>
    %65 = math.rsqrt %64 : vector<16x1xf32>
    %66 = vector.broadcast %65 : vector<16x1xf32> to vector<16x64xf32>
    %67 = arith.mulf %57, %66 : vector<16x64xf32>
    %68 = vector.broadcast %2 : vector<1x64xf32> to vector<16x64xf32>
    %69 = arith.mulf %68, %67 : vector<16x64xf32>
    %70 = vector.broadcast %3 : vector<1x64xf32> to vector<16x64xf32>
    %71 = arith.addf %69, %70 : vector<16x64xf32>
    %72 = arith.addf %38, %71 : vector<16x64xf32>
    %c2 = arith.constant 2 : index
    %c0_30 = arith.constant 0 : index
    %c0_31 = arith.constant 0 : index
    %73 = vector.load %arg1[%c2, %c0_30, %c0_31] : memref<3x16x32xbf16, #tpu.memory_space<vmem>>, vector<1x16x32xbf16>
    %74 = vector.shape_cast %73 : vector<1x16x32xbf16> to vector<16x32xbf16>
    %cst_32 = arith.constant dense<0.000000e+00> : vector<16x64xf32>
    %75 = tpu.matmul %74, %0, %cst_32 {dimension_numbers = #tpu.dot_dimension_numbers<[1], [0], [0], [1], [0, 0, 1, 1], [], []>} : vector<16x32xbf16>, vector<32x64xbf16>, vector<16x64xf32> -> vector<16x64xf32>
    %76 = vector.broadcast %1 : vector<1x64xf32> to vector<16x64xf32>
    %77 = arith.addf %75, %76 : vector<16x64xf32>
    %cst_33 = arith.constant 5.000000e-01 : f32
    %78 = vector.broadcast %cst_33 : f32 to vector<16x64xf32>
    %79 = arith.mulf %77, %78 : vector<16x64xf32>
    %cst_34 = arith.constant 0.707106769 : f32
    %80 = vector.broadcast %cst_34 : f32 to vector<16x64xf32>
    %81 = arith.mulf %77, %80 : vector<16x64xf32>
    %82 = math.erf %81 : vector<16x64xf32>
    %cst_35 = arith.constant 1.000000e+00 : f32
    %83 = vector.broadcast %cst_35 : f32 to vector<16x64xf32>
    %84 = arith.addf %83, %82 : vector<16x64xf32>
    %85 = arith.mulf %79, %84 : vector<16x64xf32>
    %cst_36 = arith.constant dense<0.000000e+00> : vector<16xf32>
    %86 = vector.multi_reduction <add>, %85, %cst_36 [1] : vector<16x64xf32> to vector<16xf32>
    %87 = vector.shape_cast %86 : vector<16xf32> to vector<16x1xf32>
    %cst_37 = arith.constant 6.400000e+01 : f32
    %88 = vector.broadcast %cst_37 : f32 to vector<16x1xf32>
    %89 = arith.divf %87, %88 : vector<16x1xf32>
    %90 = vector.broadcast %89 : vector<16x1xf32> to vector<16x64xf32>
    %91 = arith.subf %85, %90 : vector<16x64xf32>
    %92 = arith.mulf %91, %91 : vector<16x64xf32>
    %cst_38 = arith.constant dense<0.000000e+00> : vector<16xf32>
    %93 = vector.multi_reduction <add>, %92, %cst_38 [1] : vector<16x64xf32> to vector<16xf32>
    %94 = vector.shape_cast %93 : vector<16xf32> to vector<16x1xf32>
    %cst_39 = arith.constant 6.400000e+01 : f32
    %95 = vector.broadcast %cst_39 : f32 to vector<16x1xf32>
    %96 = arith.divf %94, %95 : vector<16x1xf32>
    %cst_40 = arith.constant 9.99999996E-13 : f32
    %97 = vector.broadcast %cst_40 : f32 to vector<16x1xf32>
    %98 = arith.addf %96, %97 : vector<16x1xf32>
    %99 = math.rsqrt %98 : vector<16x1xf32>
    %100 = vector.broadcast %99 : vector<16x1xf32> to vector<16x64xf32>
    %101 = arith.mulf %91, %100 : vector<16x64xf32>
    %102 = vector.broadcast %2 : vector<1x64xf32> to vector<16x64xf32>
    %103 = arith.mulf %102, %101 : vector<16x64xf32>
    %104 = vector.broadcast %3 : vector<1x64xf32> to vector<16x64xf32>
    %105 = arith.addf %103, %104 : vector<16x64xf32>
    %106 = arith.addf %72, %105 : vector<16x64xf32>
    %cst_41 = arith.constant 0.333333343 : f32
    %107 = vector.broadcast %cst_41 : f32 to vector<16x64xf32>
    %108 = arith.mulf %106, %107 : vector<16x64xf32>
    %109 = arith.truncf %108 : vector<16x64xf32> to vector<16x64xbf16>
    %c0_42 = arith.constant 0 : index
    %c0_43 = arith.constant 0 : index
    %110 = vector.load %arg6[%c0_42, %c0_43] : memref<16x64xbf16, #tpu.memory_space<vmem>>, vector<16x64xbf16>
    tpu.vector_store %arg6[%c0_42, %c0_43], %109 {strides = array<i32>} : memref<16x64xbf16, #tpu.memory_space<vmem>>, vector<16x64xbf16>,
    return
  }
  func.func @transform_0(%arg0: i32) -> (i32, i32, i32) {
    %c0_i32 = arith.constant 0 : i32
    %c0_i32_0 = arith.constant 0 : i32
    %c0_i32_1 = arith.constant 0 : i32
    return %c0_i32, %arg0, %c0_i32_0 : i32, i32, i32
  }
  func.func @transform_1(%arg0: i32) -> (i32, i32) {
    %c0_i32 = arith.constant 0 : i32
    %c0_i32_0 = arith.constant 0 : i32
    %c0_i32_1 = arith.constant 0 : i32
    return %c0_i32, %c0_i32_0 : i32, i32
  }
  func.func @transform_2(%arg0: i32) -> (i32, i32) {
    %c0_i32 = arith.constant 0 : i32
    %c0_i32_0 = arith.constant 0 : i32
    %c0_i32_1 = arith.constant 0 : i32
    return %c0_i32, %c0_i32_0 : i32, i32
  }
  func.func @transform_3(%arg0: i32) -> (i32, i32) {
    %c0_i32 = arith.constant 0 : i32
    %c0_i32_0 = arith.constant 0 : i32
    %c0_i32_1 = arith.constant 0 : i32
    return %c0_i32, %c0_i32_0 : i32, i32
  }
  func.func @transform_4(%arg0: i32) -> (i32, i32) {
    %c0_i32 = arith.constant 0 : i32
    %c0_i32_0 = arith.constant 0 : i32
    %c0_i32_1 = arith.constant 0 : i32
    return %c0_i32, %c0_i32_0 : i32, i32
  }
  func.func @transform_5(%arg0: i32) -> (i32, i32) {
    %c0_i32 = arith.constant 0 : i32
    %c0_i32_0 = arith.constant 0 : i32
    return %arg0, %c0_i32 : i32, i32
  }
}

</mosaic_0001>

<bundles_post_ra>
// kernel: tpu_custom_call.1
= control target key start
LH: loop header
LB: loop body
LE: loop exit
PB: predicated region body
PF: predicated region fallthrough
CT: control target
= control target key end

     0   :  { %10 = vsyncpa [#allocation3], 0  ;;  %s664_s0 = inlined_call_operand.hbm [shape: bf16[3,16,32], index: 0, kind: input, shape index: {}]   ;;  %s665_s1 = inlined_call_operand.hbm [shape: bf16[32,64], index: 1, kind: input, shape index: {}]   ;;  %s666_s2 = inlined_call_operand.vmem [shape: f32[1,64], index: 2, kind: input, shape index: {}]   ;;  %s667_s3 = inlined_call_operand.vmem [shape: f32[1,64], index: 3, kind: input, shape index: {}]   ;;  %s668_s4 = inlined_call_operand.vmem [shape: f32[1,64], index: 4, kind: input, shape index: {}]   ;;  %s669_s5 = inlined_call_operand.hbm [shape: bf16[16,64], index: 5, kind: output, shape index: {}]  }
   0x1   :  { %11 = vsyncpa [#allocation6], 0 }
   0x2   :  { %12 = vsyncpa [#allocation4], 0  ;;  %s558_s18 = smov [#allocation2]   ;;  %s486_s22 = scalar_lea.hbm %s664_s0, 384 }
   0x3   :  { %s18_s19 = sshll.u32 %s558_s18, 4  ;;  %p487_p0 = scmp.ne.s32.totalorder %s664_s0, %s486_s22  ;;  %s19_s19 = int_to_ptr.vmem [resolvable:$true] %s18_s19 }
   0x4   :  { %p490_p1 = scmp.lt.u32.totalorder %s486_s22, %s664_s0 }
   0x6   :  { %p492_p2 = pnand %p490_p1, %p487_p0 }
   0x8   :  { %495 = shalt.err (!%p492_p2)
}
   0x9   :  { %s496_s27 = scalar_lea.vmem %s19_s19, 384  ;;  %p501_p4 = scmp.lt.s32.totalorder %s19_s19, %s19_s19 }
   0xa   :  { %p497_p3 = scmp.ne.s32.totalorder %s19_s19, %s496_s27  ;;  %p502_p5 = scmp.lt.s32.totalorder %s496_s27, %s496_s27 }
   0xc   :  { %p503_p6 = por %p502_p5, %p501_p4 }
   0xe   :  { %p504_p7 = pnand %p503_p6, %p497_p3 }
  0x10   :  { %507 = shalt.err (!%p504_p7)
}
  0x11   :  { %s559_s28 = smov 64   ;;  %s560_s29 = smov 4  }
  0x12   :  { %24 = dma.hbm_to_vmem [thread:$0]  %s664_s0, 384, %s19_s19, [#allocation3], %s559_s28, %s559_s28, %s560_s29  }
  0x13   :  { %s561_s7 = smov [#allocation5]   ;;  %s508_s11 = scalar_lea.hbm %s665_s1, 256 }
  0x14   :  { %s30_s8 = sshll.u32 %s561_s7, 4  ;;  %p509_p8 = scmp.ne.s32.totalorder %s665_s1, %s508_s11  ;;  %s31_s8 = int_to_ptr.vmem [resolvable:$true] %s30_s8 }
  0x15   :  { %p512_p9 = scmp.lt.u32.totalorder %s508_s11, %s665_s1 }
  0x17   :  { %p514_p10 = pnand %p512_p9, %p509_p8 }
  0x19   :  { %517 = shalt.err (!%p514_p10)
}
  0x1a   :  { %s518_s16 = scalar_lea.vmem %s31_s8, 256  ;;  %p523_p12 = scmp.lt.s32.totalorder %s31_s8, %s31_s8 }
  0x1b   :  { %p519_p11 = scmp.ne.s32.totalorder %s31_s8, %s518_s16  ;;  %p524_p13 = scmp.lt.s32.totalorder %s518_s16, %s518_s16 }
  0x1d   :  { %p525_p0 = por %p524_p13, %p523_p12 }
  0x1f   :  { %p526_p1 = pnand %p525_p0, %p519_p11 }
  0x21   :  { %529 = shalt.err (!%p526_p1)
}
  0x22   :  { %36 = dma.hbm_to_vmem [thread:$0]  %s665_s1, 256, %s31_s8, [#allocation6], %s559_s28, %s559_s28, %s560_s29  }
  0x23   :  { %552 = dma.done.wait [#allocation3], 384  }
  0x24   :  { %553 = vsyncadd [#allocation3], 4294966912 }
  0x25   :  { %554 = dma.done.wait [#allocation6], 256  }
  0x26   :  { %555 = vsyncadd [#allocation6], 4294967040  ;;  %v562_v0 = vmov 0.0   ;;  %vm563_vm0 = vmmov 0   ;;  %v457_v1 = vld [vmem:[#allocation5] sm:$0xff]   ;;  %v458_v2 = vld [vmem:[#allocation5 + $0x8] sm:$0xff]  }
  0x27   :  { %426 = vmatprep.subr.bf16.mxu0 %v562_v0  ;;  %434 = vmatprep.subr.bf16.mxu1 %v562_v0  ;;  %v459_v3 = vld [vmem:[#allocation2] sm:$0xff]   ;;  %v460_v4 = vld [vmem:[#allocation2 + $0x8] sm:$0xff]   ;;  %vm82_vm1 = vcmask 261120   ;;  %v461_v5 = vld [vmem:[#allocation2 + $0x10] sm:$0xff]   ;;  %vm137_vm2 = vcmask 523264   ;;  %vm381_vm3 = vcmask 519168  }
  0x28   :  { %430 = vmatprep.mubr.msk.bf16.mxu0 %vm563_vm0, %v562_v0  ;;  %438 = vmatprep.mubr.msk.bf16.mxu1 %vm563_vm0, %v562_v0  ;;  %v402_v6 = vld [vmem:[%s666_s2] ss:$0 sm:$0xff] }
  0x29   :  { %427 = vmatpush3.bf16.msra.mxu0 %v457_v1  ;;  %435 = vmatpush3.bf16.msra.mxu1 %v457_v1 }
  0x2a   :  { %428 = vmatprep.subr.bf16.mxu0 %v562_v0  ;;  %436 = vmatprep.subr.bf16.mxu1 %v562_v0 }
  0x2d   :  { %429 = vmatpush3.bf16.msra.mxu0 %v458_v2  ;;  %437 = vmatpush3.bf16.msra.mxu1 %v458_v2 }
  0x2e   :  { %442 = vmatprep.subr.bf16.mxu0 %v562_v0 }
  0x30   :  { %431 = vmatmul.mubr.msk.bf16.vlgmr.msra.gmra.mrb[0].mxu0 %vm82_vm1, %v459_v3  ;;  %439 = vmatmul.mubr.msk.bf16.vlgmr.msra.gmra.mrb[0].mxu1 %vm82_vm1, %v460_v4 }
  0x31   :  { %443 = vmatpush3.bf16.msra.mxu0 %v457_v1  ;;  %446 = vmatprep.mubr.msk.bf16.mxu0 %vm563_vm0, %v562_v0 }
  0x32   :  { %444 = vmatprep.subr.bf16.mxu0 %v562_v0 }
  0x35   :  { %445 = vmatpush3.bf16.msra.mxu0 %v458_v2 }
  0x38   :  { %447 = vmatmul.mubr.msk.bf16.vlgmr.msra.gmra.mrb[4].mxu0 %vm82_vm1, %v461_v5 }
 0x103   :  { %v120_v7 = vpop.f32.mrb[0].mxu0  ;;  %v228_v8 = vpop.f32.mrb[0].mxu1 }
 0x104   :  { %v121_v9 = vadd.f32 %v402_v6, %v120_v7  ;;  %v229_v10 = vadd.f32 %v402_v6, %v228_v8  ;;  %v432_v11 = vpop.f32.mrb[1].mxu0  ;;  %v440_v12 = vpop.f32.mrb[1].mxu1 }
 0x105   :  { %v123_v13 = vpop.f32.mrb[2].mxu0  ;;  %v231_v14 = vpop.f32.mrb[2].mxu1 }
 0x106   :  { %v129_v15 = vmul.f32 0.70710677, %v121_v9  ;;  %v237_v16 = vmul.f32 0.70710677, %v229_v10  ;;  %v124_v17 = vadd.f32 %v402_v6, %v123_v13  ;;  %v232_v18 = vadd.f32 %v402_v6, %v231_v14  ;;  %v433_v19 = vpop.f32.mrb[3].mxu0  ;;  %v441_v20 = vpop.f32.mrb[3].mxu1 }
 0x107   :  { %v127_v33 = vmul.f32 0.5, %v121_v9  ;;  %v235_v35 = vmul.f32 0.5, %v229_v10 }
 0x108   :  { %462 = verf.f32 %v129_v15  ;;  %v130_v21 = vmul.f32 0.70710677, %v124_v17  ;;  %v238_v22 = vmul.f32 0.70710677, %v232_v18  ;;  %v128_v40 = vmul.f32 0.5, %v124_v17 }
 0x109   :  { %464 = verf.f32 %v237_v16  ;;  %v236_v43 = vmul.f32 0.5, %v232_v18 }
 0x10a   :  { %466 = verf.f32 %v130_v21 }
 0x10b   :  { %v322_v23 = vpop.f32.mrb[4].mxu0  ;;  %468 = verf.f32 %v238_v22 }
 0x10c   :  { %v323_v24 = vadd.f32 %v402_v6, %v322_v23  ;;  %v448_v25 = vpop.f32.mrb[5].mxu0 }
 0x10d   :  { %v325_v26 = vpop.f32.mrb[6].mxu0 }
 0x10e   :  { %v331_v27 = vmul.f32 0.70710677, %v323_v24  ;;  %v326_v28 = vadd.f32 %v402_v6, %v325_v26  ;;  %v449_v29 = vpop.f32.mrb[7].mxu0  ;;  %v329_v50 = vmul.f32 0.5, %v323_v24 }
 0x110   :  { %470 = verf.f32 %v331_v27  ;;  %v332_v30 = vmul.f32 0.70710677, %v326_v28  ;;  %v330_v55 = vmul.f32 0.5, %v326_v28 }
 0x112   :  { %v463_v31 = vpop.eup %462  ;;  %472 = verf.f32 %v332_v30 }
 0x113   :  { %v465_v32 = vpop.eup %464  ;;  %v133_v34 = vadd.f32 1.0, %v463_v31 }
 0x114   :  { %v241_v36 = vadd.f32 1.0, %v465_v32  ;;  %v467_v37 = vpop.eup %466 }
 0x115   :  { %v135_v38 = vmul.f32 %v133_v34, %v127_v33  ;;  %v469_v39 = vpop.eup %468  ;;  %v134_v42 = vadd.f32 1.0, %v467_v37 }
 0x116   :  { %v243_v41 = vmul.f32 %v241_v36, %v235_v35  ;;  %v242_v45 = vadd.f32 1.0, %v469_v39 }
 0x117   :  { %v138_v44 = vsel %vm137_vm2, %v135_v38, 0.0  ;;  %v136_v47 = vmul.f32 %v134_v42, %v128_v40 }
 0x118   :  { %v245_v46 = vsel %vm137_vm2, %v243_v41, 0.0  ;;  %139 = vadd.xlane.f32.xlu0 %v138_v44  ;;  %v244_v48 = vmul.f32 %v242_v45, %v236_v43 }
 0x119   :  { %246 = vadd.xlane.f32.xlu1 %v245_v46  ;;  %v141_v51 = vsel %vm137_vm2, %v136_v47, 0.0 }
 0x11a   :  { %v471_v49 = vpop.eup %470  ;;  %v248_v54 = vsel %vm137_vm2, %v244_v48, 0.0 }
 0x11b   :  { %v335_v52 = vadd.f32 1.0, %v471_v49 }
 0x11c   :  { %v473_v53 = vpop.eup %472  ;;  %142 = vadd.xlane.f32.xlu0 %v141_v51 }
 0x11d   :  { %249 = vadd.xlane.f32.xlu1 %v248_v54  ;;  %v337_v56 = vmul.f32 %v335_v52, %v329_v50  ;;  %v336_v57 = vadd.f32 1.0, %v473_v53 }
 0x11f   :  { %v339_v58 = vsel %vm137_vm2, %v337_v56, 0.0  ;;  %v338_v59 = vmul.f32 %v336_v57, %v330_v55  ;;  %v408_v55 = vld [vmem:[%s668_s4] ss:$0 sm:$0xff] }
 0x120   :  { %340 = vadd.xlane.f32.xlu0 %v339_v58 }
 0x121   :  { %v342_v60 = vsel %vm137_vm2, %v338_v59, 0.0 }
 0x122   :  { %343 = vadd.xlane.f32.xlu1 %v342_v60 }
 0x1a5   :  { %v140_v61 = vpop.xlane.xlu0 %139 }
 0x1a6   :  { %v247_v62 = vpop.xlane.xlu1 %246  ;;  %v145_v63 = vmul.f32 0.015625, %v140_v61 }
 0x1a7   :  { %v251_v0 = vmul.f32 0.015625, %v247_v62 }
 0x1a8   :  { %v147_v1 = vsub.f32 %v135_v38, %v145_v63 }
 0x1a9   :  { %v253_v2 = vsub.f32 %v243_v41, %v251_v0  ;;  %v143_v3 = vpop.xlane.xlu0 %142 }
 0x1aa   :  { %v250_v4 = vpop.xlane.xlu1 %249  ;;  %v146_v5 = vmul.f32 0.015625, %v143_v3  ;;  %v149_v6 = vmul.f32 %v147_v1, %v147_v1 }
 0x1ab   :  { %v252_v7 = vmul.f32 0.015625, %v250_v4  ;;  %v255_v8 = vmul.f32 %v253_v2, %v253_v2 }
 0x1ac   :  { %v148_v9 = vsub.f32 %v136_v47, %v146_v5  ;;  %v151_v10 = vsel %vm137_vm2, %v149_v6, 0.0 }
 0x1ad   :  { %v254_v11 = vsub.f32 %v244_v48, %v252_v7  ;;  %152 = vadd.xlane.f32.xlu0 %v151_v10  ;;  %v341_v12 = vpop.xlane.xlu0 %340  ;;  %v257_v16 = vsel %vm137_vm2, %v255_v8, 0.0  ;;  %v407_v48 = vld [vmem:[%s667_s3] ss:$0 sm:$0xff]  ;;  %s564_s3 = smov [#allocation7]  }
 0x1ae   :  { %v345_v13 = vmul.f32 0.015625, %v341_v12  ;;  %v150_v14 = vmul.f32 %v148_v9, %v148_v9  ;;  %s389_s4 = sshll.u32 %s564_s3, 4  ;;  %s390_s4 = int_to_ptr.vmem [resolvable:$true] %s389_s4 }
 0x1af   :  { %v344_v15 = vpop.xlane.xlu1 %343  ;;  %v256_v20 = vmul.f32 %v254_v11, %v254_v11  ;;  %s530_s22 = scalar_lea.vmem %s390_s4, 128  ;;  %p535_p3 = scmp.lt.s32.totalorder %s390_s4, %s390_s4 }
 0x1b0   :  { %v347_v17 = vsub.f32 %v337_v56, %v345_v13  ;;  %v346_v18 = vmul.f32 0.015625, %v344_v15  ;;  %v154_v19 = vsel %vm137_vm2, %v150_v14, 0.0  ;;  %p531_p2 = scmp.ne.s32.totalorder %s390_s4, %s530_s22  ;;  %p536_p4 = scmp.lt.s32.totalorder %s530_s22, %s530_s22 }
 0x1b1   :  { %258 = vadd.xlane.f32.xlu0 %v257_v16  ;;  %155 = vadd.xlane.f32.xlu1 %v154_v19  ;;  %v260_v24 = vsel %vm137_vm2, %v256_v20, 0.0 }
 0x1b2   :  { %v348_v21 = vsub.f32 %v338_v59, %v346_v18  ;;  %v349_v22 = vmul.f32 %v347_v17, %v347_v17  ;;  %p537_p5 = por %p536_p4, %p535_p3 }
 0x1b4   :  { %v351_v23 = vsel %vm137_vm2, %v349_v22, 0.0  ;;  %v350_v25 = vmul.f32 %v348_v21, %v348_v21  ;;  %p538_p6 = pnand %p537_p5, %p531_p2 }
 0x1b5   :  { %352 = vadd.xlane.f32.xlu0 %v351_v23  ;;  %261 = vadd.xlane.f32.xlu1 %v260_v24 }
 0x1b6   :  { %v354_v26 = vsel %vm137_vm2, %v350_v25, 0.0 }
 0x1b9   :  { %355 = vadd.xlane.f32.xlu1 %v354_v26 }
 0x23a   :  { %v153_v27 = vpop.xlane.xlu0 %152 }
 0x23b   :  { %v157_v28 = vmul.f32 0.015625, %v153_v27 }
 0x23d   :  { %v159_v29 = vadd.f32 1e-12, %v157_v28 }
 0x23e   :  { %v259_v30 = vpop.xlane.xlu0 %258  ;;  %v156_v31 = vpop.xlane.xlu1 %155 }
 0x23f   :  { %474 = vrsqrt.f32 %v159_v29  ;;  %v263_v32 = vmul.f32 0.015625, %v259_v30  ;;  %v158_v33 = vmul.f32 0.015625, %v156_v31 }
 0x241   :  { %v265_v34 = vadd.f32 1e-12, %v263_v32  ;;  %v160_v35 = vadd.f32 1e-12, %v158_v33 }
 0x242   :  { %v353_v36 = vpop.xlane.xlu0 %352  ;;  %v262_v37 = vpop.xlane.xlu1 %261 }
 0x243   :  { %476 = vrsqrt.f32 %v265_v34  ;;  %v357_v38 = vmul.f32 0.015625, %v353_v36  ;;  %v264_v39 = vmul.f32 0.015625, %v262_v37 }
 0x244   :  { %478 = vrsqrt.f32 %v160_v35 }
 0x245   :  { %v359_v40 = vadd.f32 1e-12, %v357_v38  ;;  %v266_v41 = vadd.f32 1e-12, %v264_v39 }
 0x246   :  { %v356_v42 = vpop.xlane.xlu1 %355 }
 0x247   :  { %480 = vrsqrt.f32 %v359_v40  ;;  %v358_v43 = vmul.f32 0.015625, %v356_v42 }
 0x248   :  { %482 = vrsqrt.f32 %v266_v41 }
 0x249   :  { %v475_v44 = vpop.eup %474  ;;  %v360_v45 = vadd.f32 1e-12, %v358_v43 }
 0x24a   :  { %v163_v46 = vmul.f32 %v475_v44, %v147_v1 }
 0x24b   :  { %484 = vrsqrt.f32 %v360_v45 }
 0x24c   :  { %v171_v51 = vmul.f32 %v407_v48, %v163_v46 }
 0x24d   :  { %v477_v47 = vpop.eup %476 }
 0x24e   :  { %v479_v49 = vpop.eup %478  ;;  %v269_v50 = vmul.f32 %v477_v47, %v253_v2  ;;  %v179_v61 = vadd.f32 %v408_v55, %v171_v51 }
 0x24f   :  { %v164_v53 = vmul.f32 %v479_v49, %v148_v9 }
 0x250   :  { %v271_v52 = vmul.f32 %v407_v48, %v269_v50 }
 0x251   :  { %v481_v54 = vpop.eup %480  ;;  %v172_v60 = vmul.f32 %v407_v48, %v164_v53 }
 0x252   :  { %v483_v56 = vpop.eup %482  ;;  %v363_v57 = vmul.f32 %v481_v54, %v347_v17  ;;  %v273_v58 = vadd.f32 %v408_v55, %v271_v52 }
 0x253   :  { %v270_v59 = vmul.f32 %v483_v56, %v254_v11  ;;  %v180_v5 = vadd.f32 %v408_v55, %v172_v60 }
 0x254   :  { %v365_v62 = vmul.f32 %v407_v48, %v363_v57  ;;  %v275_v3 = vadd.f32 %v273_v58, %v179_v61 }
 0x255   :  { %v485_v63 = vpop.eup %484  ;;  %v272_v0 = vmul.f32 %v407_v48, %v270_v59 }
 0x256   :  { %v364_v1 = vmul.f32 %v485_v63, %v348_v21  ;;  %v367_v2 = vadd.f32 %v408_v55, %v365_v62 }
 0x257   :  { %v274_v4 = vadd.f32 %v408_v55, %v272_v0 }
 0x258   :  { %v366_v6 = vmul.f32 %v407_v48, %v364_v1  ;;  %v369_v7 = vadd.f32 %v367_v2, %v275_v3 }
 0x259   :  { %v276_v8 = vadd.f32 %v274_v4, %v180_v5 }
 0x25a   :  { %v368_v9 = vadd.f32 %v408_v55, %v366_v6  ;;  %v371_v10 = vmul.f32 0.33333334, %v369_v7 }
 0x25c   :  { %v370_v12 = vadd.f32 %v368_v9, %v276_v8  ;;  %v415_v13 = vpack.c.bf16 %v371_v10, %v371_v10 }
 0x25e   :  { %v372_v11 = vmul.f32 0.33333334, %v370_v12  ;;  %382 = vst.msk [vmem:[#allocation7] sm:$0xf] %vm381_vm3, %v415_v13 }
 0x260   :  { %v416_v14 = vpack.c.bf16 %v372_v11, %v372_v11 }
 0x262   :  { %383 = vst.msk [vmem:[#allocation7 + $0x4] sm:$0xf] %vm381_vm3, %v416_v14 }
 0x263   :  { %541 = shalt.err (!%p538_p6)
}
 0x264   :  { %s542_s25 = scalar_lea.hbm %s669_s5, 128 }
 0x265   :  { %p543_p7 = scmp.ne.s32.totalorder %s669_s5, %s542_s25  ;;  %p546_p8 = scmp.lt.u32.totalorder %s542_s25, %s669_s5 }
 0x267   :  { %p548_p9 = pnand %p546_p8, %p543_p7 }
 0x269   :  { %551 = shalt.err (!%p548_p9)
}
 0x26a   :  { %395 = dma.vmem_to_hbm [thread:$0]  %s390_s4, 128, %s669_s5, [#allocation4], %s559_s28, %s559_s28, %s560_s29  }
 0x26b   :  { %556 = dma.done.wait [#allocation4], 128  }
 0x26c   :  { %557 = vsyncadd [#allocation4], 4294967168 }
 0x26d   :  { %399 = vsyncpa [#allocation3], 1 }
 0x26e   :  { %400 = vsyncpa [#allocation6], 1 }
 0x26f   :  { %401 = vsyncpa [#allocation4], 1 }

</bundles_post_ra>
